<compile_context>
chip_gen: v5e
topology: v5e:2x2
jax: 0.10.0
libtpu: 0.0.40
codegen_flags: <defaults>
</compile_context>

<pallas_src>
import jax
import jax.numpy as jnp
from jax.experimental import pallas as pl
from jax.experimental.pallas import tpu as pltpu


def _awl_kernel(px_ref, out_ref):
    # px_ref: (2, num) f32 in VMEM; row 0 = params, row 1 = losses.
    blk = px_ref[...].astype(jnp.float32)
    p = blk[0:1, :]                                   # (1, num)
    x = blk[1:2, :]                                   # (1, num)

    p2 = p * p                                        # params[i]**2
    # 0.5 / p2 * x, with the reciprocal on the EUP (approx) instead of a VALU
    # Newton divide sequence.
    weighted = 0.5 * x * pl.reciprocal(p2, approx=True)
    # Matches the literal PyTorch expression; jnp.log1p(p2) would be slightly
    # more accurate for tiny p2 but deviates from the spec bit-for-bit.
    reg = jnp.log(1.0 + p2)

    out_ref[...] = jnp.sum(weighted + reg, axis=-1, keepdims=True)   # (1, 1)


def _awl_forward_pallas(params, losses):
    """Single un-gridded pallas_call on a fused (2, num) operand."""
    params = jnp.asarray(params, jnp.float32).reshape(-1)
    losses = jnp.asarray(losses, jnp.float32).reshape(-1)
    px = jnp.stack([params, losses], axis=0)          # (2, num) — one input DMA

    out = pl.pallas_call(
        _awl_kernel,
        out_shape=jax.ShapeDtypeStruct((1, 1), jnp.float32),
        in_specs=[pl.BlockSpec(memory_space=pltpu.MemorySpace.VMEM)],
        out_specs=pl.BlockSpec(memory_space=pltpu.MemorySpace.VMEM),
    )(px)
    return jnp.reshape(out, ())                        # metadata-only


@jax.custom_vjp
def automatic_weighted_loss(params, losses):
    """AutomaticWeightedLoss forward.

    params: (num,) learnable weights (the nn.Parameter).
    losses: (num,) vector of task losses, stacked ONCE by the caller
            (per the perf review, rather than per-scalar reshape/stack here).
    Returns a scalar f32 loss.
    """
    return _awl_forward_pallas(params, losses)


def _awl_vjp_fwd(params, losses):
    out = _awl_forward_pallas(params, losses)
    return out, (jnp.asarray(params, jnp.float32), jnp.asarray(losses, jnp.float32))


def _awl_vjp_bwd(res, g):
    # Closed-form gradients (plain jnp; negligible cost, differentiable for free):
    #   d/dp_i   = -loss_i / p_i^3 + 2 p_i / (1 + p_i^2)
    #   d/dx_i   =  0.5 / p_i^2
    p, x = res
    p2 = p * p
    dp = g * (-x / (p2 * p) + 2.0 * p / (1.0 + p2))
    dx = g * (0.5 / p2)
    return dp, dx


automatic_weighted_loss.defvjp(_awl_vjp_fwd, _awl_vjp_bwd)


def _reference_jax(params, losses):
    p = jnp.asarray(params, jnp.float32)
    x = jnp.asarray(losses, jnp.float32)
    p2 = p * p
    return jnp.sum(0.5 / p2 * x + jnp.log(1.0 + p2))


if __name__ == "__main__":
    key = jax.random.PRNGKey(0)
    k1, k2 = jax.random.split(key)

    num = 3
    # nn.Parameter initializes to ones; perturb slightly (strictly positive),
    # as training would keep it.
    params = 1.0 + 0.25 * jax.random.normal(k1, (num,), dtype=jnp.float32)
    # Three task losses (scalars in the PyTorch usage) — stacked ONCE here.
    raw = jax.random.uniform(k2, (num,), dtype=jnp.float32, minval=0.1, maxval=3.0)
    losses = raw                                       # (num,)

    total = automatic_weighted_loss(params, losses)
    total = jax.block_until_ready(total)

    ref = _reference_jax(params, losses)
    # Tolerance loosened slightly vs. exact math because the kernel uses the
    # approx (EUP) reciprocal, per the review.
    assert jnp.allclose(total, ref, rtol=1e-3, atol=1e-3), (total, ref)

    # Gradient check (custom_vjp backward is exact, plain jnp).
    gp, gx = jax.grad(automatic_weighted_loss, argnums=(0, 1))(params, losses)
    rp, rx = jax.grad(lambda p, x: _reference_jax(p, x), argnums=(0, 1))(params, losses)
    gp, gx = jax.block_until_ready((gp, gx))
    assert jnp.allclose(gp, rp, rtol=1e-5, atol=1e-5), (gp, rp)
    assert jnp.allclose(gx, rx, rtol=1e-5, atol=1e-5), (gx, rx)

    print("KERNEL_OK")
</pallas_src>

<mosaic_0001>
module attributes {stable_mosaic.version = 11 : i64} {
  func.func @_awl_kernel(%arg0: memref<2x3xf32, #tpu.memory_space<vmem>>, %arg1: memref<1x1xf32, #tpu.memory_space<vmem>>) attributes {dimension_semantics = [], scalar_prefetch = 0 : i64, scratch_operands = 0 : i64, tpu.core_type = #tpu.core_type<tc>} {
    %c0 = arith.constant 0 : index
    %c0_0 = arith.constant 0 : index
    %0 = vector.load %arg0[%c0, %c0_0] : memref<2x3xf32, #tpu.memory_space<vmem>>, vector<2x3xf32>
    %1 = vector.extract_strided_slice %0 {offsets = [0, 0], sizes = [1, 3], strides = [1, 1]} : vector<2x3xf32> to vector<1x3xf32>
    %2 = vector.extract_strided_slice %0 {offsets = [1, 0], sizes = [1, 3], strides = [1, 1]} : vector<2x3xf32> to vector<1x3xf32>
    %3 = arith.mulf %1, %1 : vector<1x3xf32>
    %cst = arith.constant 5.000000e-01 : f32
    %4 = vector.broadcast %cst : f32 to vector<1x3xf32>
    %5 = arith.mulf %4, %2 : vector<1x3xf32>
    %6 = tpu.reciprocal %3 {approx = true} : vector<1x3xf32> -> vector<1x3xf32>
    %7 = arith.mulf %5, %6 : vector<1x3xf32>
    %cst_1 = arith.constant 1.000000e+00 : f32
    %8 = vector.broadcast %cst_1 : f32 to vector<1x3xf32>
    %9 = arith.addf %8, %3 : vector<1x3xf32>
    %10 = math.log %9 : vector<1x3xf32>
    %11 = arith.addf %7, %10 : vector<1x3xf32>
    %cst_2 = arith.constant dense<0.000000e+00> : vector<1xf32>
    %12 = vector.multi_reduction <add>, %11, %cst_2 [1] : vector<1x3xf32> to vector<1xf32>
    %13 = vector.shape_cast %12 : vector<1xf32> to vector<1x1xf32>
    %c0_3 = arith.constant 0 : index
    %c0_4 = arith.constant 0 : index
    %14 = vector.load %arg1[%c0_3, %c0_4] : memref<1x1xf32, #tpu.memory_space<vmem>>, vector<1x1xf32>
    tpu.vector_store %arg1[%c0_3, %c0_4], %13 {strides = array<i32>} : memref<1x1xf32, #tpu.memory_space<vmem>>, vector<1x1xf32>,
    return
  }
}

</mosaic_0001>

<bundles_post_ra>
// kernel: tpu_custom_call.1
= control target key start
LH: loop header
LB: loop body
LE: loop exit
PB: predicated region body
PF: predicated region fallthrough
CT: control target
= control target key end

     0   :  { %6 = vsyncpa [#allocation3], 0  ;;  %s137_s0 = inlined_call_operand.hbm [shape: f32[2,3], index: 0, kind: input, shape index: {}]   ;;  %s138_s1 = inlined_call_operand.hbm [shape: f32[1,1], index: 1, kind: output, shape index: {}]  }
   0x1   :  { %7 = vsyncpa [#allocation4], 0  ;;  %s13_s8 = sshll.u32 %s137_s0, 4  ;;  %s119_s9 = smov [#allocation2]   ;;  %s14_s8 = int_to_ptr.hbm [resolvable:$true] %s13_s8 }
   0x2   :  { %s15_s10 = sshll.u32 %s119_s9, 4  ;;  %s16_s10 = int_to_ptr.vmem [resolvable:$true] %s15_s10 }
   0x3   :  { %18 = dma.hbm_to_vmem [thread:$0]  %s14_s8, 32, %s16_s10, [#allocation3]  }
   0x4   :  { %115 = dma.done.wait [#allocation3], 32  }
   0x5   :  { %116 = vsyncadd [#allocation3], 4294967264  ;;  %v23_v0 = vld [vmem:[#allocation2] sm:$0x3]  ;;  %vm38_vm0 = vcmask 17409   ;;  %s120_s0 = smov [#allocation5]  }
   0x6   :  { %v24_v1 = vmul.f32 %v23_v0, %v23_v0  ;;  %v25_v3 = vmul.f32 0.5, %v23_v0  ;;  %s49_s11 = sshll.u32 %s120_s0, 4  ;;  %s51_s14 = sshll.u32 %s138_s1, 4  ;;  %vm42_vm1 = vcmask 1025   ;;  %s50_s11 = int_to_ptr.vmem [resolvable:$true] %s49_s11  ;;  %s52_s14 = int_to_ptr.hbm [resolvable:$true] %s51_s14 }
   0x8   :  { %63 = vrcp.f32 %v24_v1  ;;  %v31_v2 = vadd.f32 1.0, %v24_v1 }
   0xa   :  { %65 = vlog2.f32 %v31_v2 }
   0xe   :  { %v64_v4 = vpop.eup %63 }
   0xf   :  { %v28_v5 = vrot.slane %v64_v4, 7 }
  0x10   :  { %v66_v6 = vpop.eup %65 }
  0x11   :  { %v30_v7 = vmul.f32 %v28_v5, %v25_v3  ;;  %v33_v8 = vmul.f32 0.6931472, %v66_v6 }
  0x13   :  { %v35_v9 = vrot.slane %v33_v8, 7 }
  0x15   :  { %v37_v10 = vadd.f32 %v35_v9, %v30_v7 }
  0x17   :  { %v39_v11 = vsel %vm38_vm0, %v37_v10, 0.0 }
  0x18   :  { %40 = vadd.xlane.f32.xlu0 %v39_v11 }
  0x8b   :  { %v41_v12 = vpop.xlane.xlu0 %40 }
  0x8c   :  { %43 = vst.msk [vmem:[#allocation5 - $0x1] sm:$0x2] %vm42_vm1, %v41_v12 }
  0x8d   :  { %54 = dma.vmem_to_hbm [thread:$0]  %s50_s11, 16, %s52_s14, [#allocation4]  }
  0x8e   :  { %117 = dma.done.wait [#allocation4], 16  }
  0x8f   :  { %118 = vsyncadd [#allocation4], 4294967280 }
  0x90   :  { %59 = vsyncpa [#allocation3], 1 }
  0x91   :  { %60 = vsyncpa [#allocation4], 1 }

</bundles_post_ra>
